<compile_context>
chip_gen: v7x
topology: tpu7x:2x2x1
jax: 0.10.0
libtpu: 0.0.40
codegen_flags: <defaults>
</compile_context>

<pallas_src>
import jax
import jax.numpy as jnp
from jax.experimental import pallas as pl
from jax.experimental.pallas import tpu as pltpu


_SMALL_ROWS = 256                      # below this: single exact block
_VMEM_BLOCK_SOFT_CAP = 20 * 2**20      # budget for double-buffered x + out blocks
_VMEM_LIMIT_TRIGGER = 12 * 2**20       # above this, raise the scoped VMEM limit (v5e default = 16 MiB)


def _round_up(n, m):
    return ((n + m - 1) // m) * m


def _mapper_kernel(x_ref, w1_ref, b1_ref, w2_ref, b2_ref, o_ref):
    # x is streamed in its original dtype; the cast to the MXU compute dtype
    # happens here on the VPU (hidden under DMA/MXU), not as a separate HBM
    # convert pass in the wrapper.  No-op when compute_dtype is f32.
    x = x_ref[...].astype(w1_ref.dtype)
    h = jnp.dot(x, w1_ref[...], preferred_element_type=jnp.float32)
    h = jnp.maximum(h + b1_ref[...], 0.0)                      # bias + ReLU in f32 (VPU)
    y = jnp.dot(h.astype(w2_ref.dtype), w2_ref[...],
                preferred_element_type=jnp.float32)
    o_ref[...] = (y + b2_ref[...]).astype(o_ref.dtype)


def _resident_spec(shape, single_buffer):
    """BlockSpec for an operand whose block is identical at every grid step."""
    index_map = lambda i: (0,) * len(shape)
    if single_buffer:
        # Constant index_map -> fetched once; double-buffering it only wastes
        # VMEM.  Worth requesting only when the weights are multi-MiB
        # ('feature' inputs: F=2048, H~1024).  Guarded so an older jax without
        # pipeline_mode / Buffered still works (falls back to the default).
        try:
            return pl.BlockSpec(shape, index_map, pipeline_mode=pl.Buffered(1))
        except (TypeError, AttributeError):
            pass
    return pl.BlockSpec(shape, index_map)


def _choose_tile_rows(R, tm, bytes_per_row):
    if R <= _SMALL_ROWS:
        # Single full-extent block: legal for any R (block dim == array dim),
        # no masking, no pipeline/per-step overhead.
        return R
    tm_r = max(256, _round_up(tm, 256))
    # Big tiles amortize the ~0.35 us per-step overhead and give long DMAs,
    # but keep >= 2 "parallel" grid steps so both v7x TensorCores get work.
    tile = min(tm_r, _round_up(pl.cdiv(R, 2), 256))
    # Cap so double-buffered x + out blocks stay well inside VMEM on every
    # generation (v7x: 64 MiB physical / 32 MiB default scoped).
    cap = max(256, (_VMEM_BLOCK_SOFT_CAP // (2 * bytes_per_row)) // 256 * 256)
    return max(256, min(tile, cap))


def g2g_mapper(x, w1, b1, w2, b2, *, tm=1024,
               compute_dtype=jnp.bfloat16, out_dtype=None):
    """Apply Sequential(Linear, ReLU, Linear) over the last dim of x.

    x: [..., F];  w1: [F, H], b1: [H];  w2: [H, H], b2: [H]
    (weights stored [in, out] = transpose of PyTorch's [out, in]).

    compute_dtype: MXU operand dtype (bf16 default, f32 accumulation; pass
        None for the bit-faithful f32 path).
    out_dtype: output dtype (default x.dtype; pass jnp.bfloat16 if the
        downstream translation network consumes bf16 -> halves writeback bytes).
    """
    orig_shape = x.shape
    F = orig_shape[-1]
    H = w2.shape[1]
    if out_dtype is None:
        out_dtype = x.dtype

    x2d = x.reshape(-1, F)
    R = x2d.shape[0]

    cd = compute_dtype if compute_dtype is not None else w1.dtype
    w1_cd = w1.astype(cd)
    w2_cd = w2.astype(cd)
    b1_2d = b1.reshape(1, H).astype(jnp.float32)
    b2_2d = b2.reshape(1, H).astype(jnp.float32)

    x_item = jnp.dtype(x.dtype).itemsize
    o_item = jnp.dtype(out_dtype).itemsize
    cd_item = jnp.dtype(cd).itemsize

    bytes_per_row = F * x_item + H * o_item
    tile_rows = _choose_tile_rows(R, tm, bytes_per_row)
    # Ragged last block is handled by Pallas: partial reads are padded with
    # unspecified rows (row-independent compute, so no contamination) and the
    # corresponding output rows are never written back.
    grid = (pl.cdiv(R, tile_rows),)

    w_bytes = (F * H + H * H) * cd_item + 2 * H * 4
    single_buffer_weights = w_bytes > 2 * 2**20
    vmem_est = 2 * tile_rows * bytes_per_row + (1 if single_buffer_weights else 2) * w_bytes

    cp_kwargs = dict(dimension_semantics=("parallel",))
    if vmem_est > _VMEM_LIMIT_TRIGGER:
        # Keep the big-tile win on v5e (16 MiB default scoped VMEM); stay under
        # v7x's 64 MiB physical VMEM.
        cp_kwargs["vmem_limit_bytes"] = int(min(max(vmem_est * 3 // 2, 32 * 2**20),
                                                56 * 2**20))

    out = pl.pallas_call(
        _mapper_kernel,
        out_shape=jax.ShapeDtypeStruct((R, H), out_dtype),
        grid_spec=pltpu.PrefetchScalarGridSpec(
            num_scalar_prefetch=0,
            grid=grid,
            in_specs=[
                pl.BlockSpec((tile_rows, F), lambda i: (i, 0)),   # x row tile (orig dtype)
                _resident_spec((F, H), single_buffer_weights),    # W1 (resident)
                _resident_spec((1, H), single_buffer_weights),    # b1
                _resident_spec((H, H), single_buffer_weights),    # W2 (resident)
                _resident_spec((1, H), single_buffer_weights),    # b2
            ],
            out_specs=pl.BlockSpec((tile_rows, H), lambda i: (i, 0)),
        ),
        compiler_params=pltpu.CompilerParams(**cp_kwargs),
    )(x2d, w1_cd, b1_2d, w2_cd, b2_2d)

    return out.reshape(*orig_shape[:-1], H)


class SignLanguageModelG2G:
    """JAX/Pallas port of SignLanguageModel.forward for task='G2G',
    input_type in ('feature', 'prob'): applies the mapper MLP to
    translation_inputs['input_feature'].  The TranslationNetwork that consumes
    the mapped feature is an external module (not defined in the spec)."""

    def __init__(self, in_features, input_dim, key):
        k1, k2, k3, k4 = jax.random.split(key, 4)
        # PyTorch nn.Linear-style uniform init; f32 master weights, [in, out].
        bound1 = 1.0 / float(jnp.sqrt(in_features))
        bound2 = 1.0 / float(jnp.sqrt(input_dim))
        self.w1 = jax.random.uniform(k1, (in_features, input_dim),
                                     jnp.float32, -bound1, bound1)
        self.b1 = jax.random.uniform(k2, (input_dim,),
                                     jnp.float32, -bound1, bound1)
        self.w2 = jax.random.uniform(k3, (input_dim, input_dim),
                                     jnp.float32, -bound2, bound2)
        self.b2 = jax.random.uniform(k4, (input_dim,),
                                     jnp.float32, -bound2, bound2)
        self._mapper = jax.jit(g2g_mapper)

    def forward(self, input_feature):
        # TODO(synk): in the full model this mapped feature is consumed by
        # self.translation_network(**translation_inputs); that module is external.
        return self._mapper(input_feature, self.w1, self.b1, self.w2, self.b2)


def _reference_f32(x, w1, b1, w2, b2):
    h = jnp.maximum(x @ w1 + b1, 0.0)
    return h @ w2 + b2


def _reference_matched(x, w1, b1, w2, b2, cd):
    # Same bf16-operand / f32-accumulate recipe as the kernel.
    h = jnp.dot(x.astype(cd), w1.astype(cd), preferred_element_type=jnp.float32)
    h = jnp.maximum(h + b1.astype(jnp.float32), 0.0)
    y = jnp.dot(h.astype(cd), w2.astype(cd), preferred_element_type=jnp.float32)
    return y + b2.astype(jnp.float32)


if __name__ == "__main__":
    key = jax.random.PRNGKey(0)
    k_model, k_x1, k_x2, k_x3 = jax.random.split(key, 4)

    # 'prob' input_type with a small class vocabulary -> in_features = cls_num
    # = 128; translation_network.input_dim = 128.
    B, T, IN_FEATURES, INPUT_DIM = 2, 8, 128, 128
    model = SignLanguageModelG2G(IN_FEATURES, INPUT_DIM, k_model)

    # Case 1: tiny input -> single exact block (R = 16), grid of 1.
    x_small = jax.random.normal(k_x1, (B, T, IN_FEATURES), jnp.float32)
    out_small = jax.block_until_ready(model.forward(x_small))
    assert out_small.shape == (B, T, INPUT_DIM)

    # Case 2: tiny, non-multiple-of-8 row count (R = 21) -> single exact block.
    x_odd = jax.random.normal(k_x3, (3, 7, IN_FEATURES), jnp.float32)
    out_odd = jax.block_until_ready(model.forward(x_odd))
    assert out_odd.shape == (3, 7, INPUT_DIM)

    # Case 3: R = 400 -> 256-row tiles, 2 "parallel" grid steps (megacore),
    # ragged last block, no pad/slice copies in the wrapper.
    x_large = jax.random.normal(k_x2, (4, 100, IN_FEATURES), jnp.float32)
    out_large = jax.block_until_ready(model.forward(x_large))
    assert out_large.shape == (4, 100, INPUT_DIM)

    for x, out in ((x_small, out_small), (x_odd, out_odd), (x_large, out_large)):
        ref_m = _reference_matched(x, model.w1, model.b1, model.w2, model.b2,
                                   jnp.bfloat16)
        ref_f = _reference_f32(x, model.w1, model.b1, model.w2, model.b2)
        # Tight check against the precision-matched reference.
        assert jnp.allclose(out, ref_m, atol=1e-3, rtol=1e-3), \
            float(jnp.max(jnp.abs(out - ref_m)))
        # Loose check against the full-f32 PyTorch-equivalent reference
        # (documents the intentional bf16-operand precision choice).
        assert jnp.allclose(out, ref_f, atol=6e-2, rtol=6e-2), \
            float(jnp.max(jnp.abs(out - ref_f)))

    # Opt-in bit-faithful path: compute_dtype=None keeps f32 MXU operands.
    out_f32 = jax.block_until_ready(
        g2g_mapper(x_large, model.w1, model.b1, model.w2, model.b2,
                   compute_dtype=None))
    ref_f = _reference_f32(x_large, model.w1, model.b1, model.w2, model.b2)
    # Moderate tolerance: XLA and Mosaic may pick different f32 matmul pass counts.
    assert jnp.allclose(out_f32, ref_f, atol=3e-2, rtol=3e-2), \
        float(jnp.max(jnp.abs(out_f32 - ref_f)))

    print("KERNEL_OK")
</pallas_src>

<mosaic_0001>
module attributes {stable_mosaic.version = 11 : i64} {
  func.func @_mapper_kernel(%arg0: i32, %arg1: memref<16x128xf32, #tpu.memory_space<vmem>>, %arg2: memref<128x128xbf16, #tpu.memory_space<vmem>>, %arg3: memref<1x128xf32, #tpu.memory_space<vmem>>, %arg4: memref<128x128xbf16, #tpu.memory_space<vmem>>, %arg5: memref<1x128xf32, #tpu.memory_space<vmem>>, %arg6: memref<16x128xf32, #tpu.memory_space<vmem>>) attributes {dimension_semantics = [#tpu.dimension_semantics<parallel>], iteration_bounds = array<i64: 1>, scalar_prefetch = 0 : i64, scratch_operands = 0 : i64, tpu.core_type = #tpu.core_type<tc>, window_params = [{transform_indices = @transform_0, window_bounds = array<i64: 16, 128>}, {pipeline_mode = #tpu.pipeline_mode<synchronous>, transform_indices = @transform_1, window_bounds = array<i64: 128, 128>}, {pipeline_mode = #tpu.pipeline_mode<synchronous>, transform_indices = @transform_2, window_bounds = array<i64: 1, 128>}, {pipeline_mode = #tpu.pipeline_mode<synchronous>, transform_indices = @transform_3, window_bounds = array<i64: 128, 128>}, {pipeline_mode = #tpu.pipeline_mode<synchronous>, transform_indices = @transform_4, window_bounds = array<i64: 1, 128>}, {transform_indices = @transform_5, window_bounds = array<i64: 16, 128>}]} {
    %c0 = arith.constant 0 : index
    %c0_0 = arith.constant 0 : index
    %0 = vector.load %arg1[%c0, %c0_0] : memref<16x128xf32, #tpu.memory_space<vmem>>, vector<16x128xf32>
    %1 = arith.truncf %0 : vector<16x128xf32> to vector<16x128xbf16>
    %c0_1 = arith.constant 0 : index
    %c0_2 = arith.constant 0 : index
    %2 = vector.load %arg2[%c0_1, %c0_2] : memref<128x128xbf16, #tpu.memory_space<vmem>>, vector<128x128xbf16>
    %cst = arith.constant dense<0.000000e+00> : vector<16x128xf32>
    %3 = tpu.matmul %1, %2, %cst {dimension_numbers = #tpu.dot_dimension_numbers<[1], [0], [0], [1], [0, 0, 1, 1], [], []>} : vector<16x128xbf16>, vector<128x128xbf16>, vector<16x128xf32> -> vector<16x128xf32>
    %c0_3 = arith.constant 0 : index
    %c0_4 = arith.constant 0 : index
    %4 = vector.load %arg3[%c0_3, %c0_4] : memref<1x128xf32, #tpu.memory_space<vmem>>, vector<1x128xf32>
    %5 = vector.broadcast %4 : vector<1x128xf32> to vector<16x128xf32>
    %6 = arith.addf %3, %5 : vector<16x128xf32>
    %cst_5 = arith.constant 0.000000e+00 : f32
    %7 = vector.broadcast %cst_5 : f32 to vector<16x128xf32>
    %8 = arith.maximumf %6, %7 : vector<16x128xf32>
    %9 = arith.truncf %8 : vector<16x128xf32> to vector<16x128xbf16>
    %c0_6 = arith.constant 0 : index
    %c0_7 = arith.constant 0 : index
    %10 = vector.load %arg4[%c0_6, %c0_7] : memref<128x128xbf16, #tpu.memory_space<vmem>>, vector<128x128xbf16>
    %cst_8 = arith.constant dense<0.000000e+00> : vector<16x128xf32>
    %11 = tpu.matmul %9, %10, %cst_8 {dimension_numbers = #tpu.dot_dimension_numbers<[1], [0], [0], [1], [0, 0, 1, 1], [], []>} : vector<16x128xbf16>, vector<128x128xbf16>, vector<16x128xf32> -> vector<16x128xf32>
    %c0_9 = arith.constant 0 : index
    %c0_10 = arith.constant 0 : index
    %12 = vector.load %arg5[%c0_9, %c0_10] : memref<1x128xf32, #tpu.memory_space<vmem>>, vector<1x128xf32>
    %13 = vector.broadcast %12 : vector<1x128xf32> to vector<16x128xf32>
    %14 = arith.addf %11, %13 : vector<16x128xf32>
    %c0_11 = arith.constant 0 : index
    %c0_12 = arith.constant 0 : index
    %15 = vector.load %arg6[%c0_11, %c0_12] : memref<16x128xf32, #tpu.memory_space<vmem>>, vector<16x128xf32>
    tpu.vector_store %arg6[%c0_11, %c0_12], %14 {strides = array<i32>} : memref<16x128xf32, #tpu.memory_space<vmem>>, vector<16x128xf32>,
    return
  }
  func.func @transform_0(%arg0: i32) -> (i32, i32) {
    %c0_i32 = arith.constant 0 : i32
    %c0_i32_0 = arith.constant 0 : i32
    return %arg0, %c0_i32 : i32, i32
  }
  func.func @transform_1(%arg0: i32) -> (i32, i32) {
    %c0_i32 = arith.constant 0 : i32
    %c0_i32_0 = arith.constant 0 : i32
    %c0_i32_1 = arith.constant 0 : i32
    return %c0_i32, %c0_i32_0 : i32, i32
  }
  func.func @transform_2(%arg0: i32) -> (i32, i32) {
    %c0_i32 = arith.constant 0 : i32
    %c0_i32_0 = arith.constant 0 : i32
    %c0_i32_1 = arith.constant 0 : i32
    return %c0_i32, %c0_i32_0 : i32, i32
  }
  func.func @transform_3(%arg0: i32) -> (i32, i32) {
    %c0_i32 = arith.constant 0 : i32
    %c0_i32_0 = arith.constant 0 : i32
    %c0_i32_1 = arith.constant 0 : i32
    return %c0_i32, %c0_i32_0 : i32, i32
  }
  func.func @transform_4(%arg0: i32) -> (i32, i32) {
    %c0_i32 = arith.constant 0 : i32
    %c0_i32_0 = arith.constant 0 : i32
    %c0_i32_1 = arith.constant 0 : i32
    return %c0_i32, %c0_i32_0 : i32, i32
  }
  func.func @transform_5(%arg0: i32) -> (i32, i32) {
    %c0_i32 = arith.constant 0 : i32
    %c0_i32_0 = arith.constant 0 : i32
    return %arg0, %c0_i32 : i32, i32
  }
}

</mosaic_0001>

<bundles_post_ra>
// kernel: g2g_mapper.1
= control target key start
LH: loop header
LB: loop body
LE: loop exit
PB: predicated region body
PF: predicated region fallthrough
CT: control target
= control target key end

     0   :  { %v391_v1 = vmov 0.0   ;;  %vm392_vm0 = vmmov 0   ;;  %s498_s0 = inlined_call_operand.vmem [shape: f32[16,128], index: 0, kind: input, shape index: {}]   ;;  %s499_s1 = inlined_call_operand.vmem [shape: bf16[128,128], index: 1, kind: input, shape index: {}]   ;;  %s500_s2 = inlined_call_operand.vmem [shape: f32[1,128], index: 2, kind: input, shape index: {}]   ;;  %s501_s3 = inlined_call_operand.vmem [shape: bf16[128,128], index: 3, kind: input, shape index: {}]   ;;  %s502_s4 = inlined_call_operand.vmem [shape: f32[1,128], index: 4, kind: input, shape index: {}]   ;;  %s503_s5 = inlined_call_operand.hbm [shape: f32[16,128], index: 5, kind: output, shape index: {}]  }
   0x1   :  { %v351_v0 = vld [vmem:[%s499_s1] sm:$0xff]   ;;  %306 = vmatprep.subr.bf16.mxu0 %v391_v1  ;;  %326 = vmatprep.subr.bf16.mxu1 %v391_v1  ;;  %v352_v2 = vld [vmem:[%s499_s1 + $0x8] sm:$0xff]   ;;  %v353_v3 = vld [vmem:[%s499_s1 + $0x10] sm:$0xff]  }
   0x2   :  { %307 = vmatpush3.bf16.msra.mxu0 %v351_v0  ;;  %322 = vmatprep.mubr.msk.bf16.mxu0 %vm392_vm0, %v391_v1  ;;  %v359_v4 = vld [vmem:[%s501_s3] sm:$0xff]   ;;  %v354_v5 = vld [vmem:[%s499_s1 + $0x18] sm:$0xff]   ;;  %v360_v6 = vld [vmem:[%s501_s3 + $0x8] sm:$0xff]  }
   0x3   :  { %308 = vmatprep.subr.bf16.mxu0 %v391_v1  ;;  %342 = vmatprep.mubr.msk.bf16.mxu1 %vm392_vm0, %v391_v1  ;;  %v355_v7 = vld [vmem:[%s499_s1 + $0x20] sm:$0xff]   ;;  %v361_v8 = vld [vmem:[%s501_s3 + $0x10] sm:$0xff]  }
   0x4   :  { %327 = vmatpush3.bf16.msra.mxu1 %v359_v4 }
   0x5   :  { %328 = vmatprep.subr.bf16.mxu1 %v391_v1 }
   0x6   :  { %309 = vmatpush3.bf16.msra.mxu0 %v352_v2 }
   0x7   :  { %310 = vmatprep.subr.bf16.mxu0 %v391_v1 }
   0x8   :  { %329 = vmatpush3.bf16.msra.mxu1 %v360_v6 }
   0x9   :  { %330 = vmatprep.subr.bf16.mxu1 %v391_v1 }
   0xa   :  { %311 = vmatpush3.bf16.msra.mxu0 %v353_v3 }
   0xb   :  { %312 = vmatprep.subr.bf16.mxu0 %v391_v1 }
   0xe   :  { %313 = vmatpush3.bf16.msra.mxu0 %v354_v5 }
   0xf   :  { %314 = vmatprep.subr.bf16.mxu0 %v391_v1 }
  0x10   :  { %10 = vsyncpa [#allocation3], 0  ;;  %v356_v9 = vld [vmem:[%s499_s1 + $0x28] sm:$0xff]   ;;  %331 = vmatpush3.bf16.msra.mxu1 %v361_v8  ;;  %v362_v10 = vld [vmem:[%s501_s3 + $0x18] sm:$0xff]  }
  0x11   :  { %332 = vmatprep.subr.bf16.mxu1 %v391_v1  ;;  %v357_v11 = vld [vmem:[%s499_s1 + $0x30] sm:$0xff]   ;;  %v363_v12 = vld [vmem:[%s501_s3 + $0x20] sm:$0xff]   ;;  %v358_v13 = vld [vmem:[%s499_s1 + $0x38] sm:$0xff]  }
  0x12   :  { %315 = vmatpush3.bf16.msra.mxu0 %v355_v7  ;;  %v22_v14 = vld [vmem:[%s498_s0] sm:$0xff]  ;;  %v23_v15 = vld [vmem:[%s498_s0 + $0x8] sm:$0xff]  ;;  %v365_v18 = vld [vmem:[%s501_s3 + $0x30] sm:$0xff]  }
  0x13   :  { %316 = vmatprep.subr.bf16.mxu0 %v391_v1  ;;  %v364_v16 = vld [vmem:[%s501_s3 + $0x28] sm:$0xff]   ;;  %v24_v17 = vpack.c.bf16 %v23_v15, %v22_v14  ;;  %v366_v19 = vld [vmem:[%s501_s3 + $0x38] sm:$0xff]   ;;  %v270_v20 = vld [vmem:[%s500_s2] ss:$0 sm:$0xff]  ;;  %s393_s3 = smov [#allocation2]  }
  0x14   :  { %333 = vmatpush3.bf16.msra.mxu1 %v362_v10  ;;  %v279_v30 = vld [vmem:[%s502_s4] ss:$0 sm:$0xff]  ;;  %s259_s6 = sshll.u32 %s393_s3, 4  ;;  %s260_s6 = int_to_ptr.vmem [resolvable:$true] %s259_s6 }
  0x15   :  { %334 = vmatprep.subr.bf16.mxu1 %v391_v1  ;;  %s367_s2 = scalar_lea.vmem %s260_s6, 256  ;;  %p372_p1 = scmp.lt.s32.totalorder %s260_s6, %s260_s6 }
  0x16   :  { %317 = vmatpush3.bf16.msra.mxu0 %v356_v9  ;;  %p368_p0 = scmp.ne.s32.totalorder %s260_s6, %s367_s2  ;;  %p373_p2 = scmp.lt.s32.totalorder %s367_s2, %s367_s2 }
  0x17   :  { %318 = vmatprep.subr.bf16.mxu0 %v391_v1 }
  0x18   :  { %335 = vmatpush3.bf16.msra.mxu1 %v363_v12  ;;  %p374_p3 = por %p373_p2, %p372_p1 }
  0x19   :  { %336 = vmatprep.subr.bf16.mxu1 %v391_v1 }
  0x1a   :  { %319 = vmatpush3.bf16.msra.mxu0 %v357_v11  ;;  %p375_p4 = pnand %p374_p3, %p368_p0 }
  0x1b   :  { %320 = vmatprep.subr.bf16.mxu0 %v391_v1 }
  0x1c   :  { %337 = vmatpush3.bf16.msra.mxu1 %v364_v16 }
  0x1d   :  { %338 = vmatprep.subr.bf16.mxu1 %v391_v1 }
  0x1e   :  { %321 = vmatpush3.bf16.msra.mxu0 %v358_v13 }
  0x20   :  { %339 = vmatpush3.bf16.msra.mxu1 %v365_v18 }
  0x21   :  { %323 = vmatmul.mubr.bf16.vlgmr.msra.gmra.mrb[0].mxu0 %v24_v17  ;;  %340 = vmatprep.subr.bf16.mxu1 %v391_v1 }
  0x24   :  { %341 = vmatpush3.bf16.msra.mxu1 %v366_v19 }
  0xf4   :  { %v130_v21 = vpop.f32.mrb[0].mxu0 }
  0xf5   :  { %v131_v22 = vadd.f32 %v270_v20, %v130_v21  ;;  %v324_v23 = vpop.f32.mrb[1].mxu0 }
  0xf6   :  { %v133_v24 = vpop.f32.mrb[2].mxu0 }
  0xf7   :  { %v134_v25 = vadd.f32 %v270_v20, %v133_v24  ;;  %v325_v26 = vpop.f32.mrb[3].mxu0  ;;  %v137_v27 = vmax.f32 %v131_v22, 0.0 }
  0xf9   :  { %v138_v28 = vmax.f32 %v134_v25, 0.0 }
  0xfb   :  { %v139_v29 = vpack.c.bf16 %v138_v28, %v137_v27 }
  0xfd   :  { %343 = vmatmul.mubr.bf16.vlgmr.msra.gmra.mrb[0].mxu1 %v139_v29 }
 0x1d0   :  { %v245_v31 = vpop.f32.mrb[0].mxu1 }
 0x1d1   :  { %v246_v32 = vadd.f32 %v279_v30, %v245_v31  ;;  %v344_v33 = vpop.f32.mrb[1].mxu1 }
 0x1d2   :  { %v248_v34 = vpop.f32.mrb[2].mxu1 }
 0x1d3   :  { %252 = vst [vmem:[#allocation2] sm:$0xff] %v246_v32  ;;  %v249_v35 = vadd.f32 %v279_v30, %v248_v34  ;;  %v345_v36 = vpop.f32.mrb[3].mxu1 }
 0x1d5   :  { %253 = vst [vmem:[#allocation2 + $0x8] sm:$0xff] %v249_v35 }
 0x1d6   :  { %378 = shalt.err (!%p375_p4)
}
 0x1d7   :  { %s379_s8 = scalar_lea.hbm %s503_s5, 256 }
 0x1d8   :  { %p380_p5 = scmp.ne.s32.totalorder %s503_s5, %s379_s8  ;;  %p383_p6 = scmp.lt.u32.totalorder %s379_s8, %s503_s5 }
 0x1da   :  { %p385_p7 = pnand %p383_p6, %p380_p5 }
 0x1dc   :  { %388 = shalt.err (!%p385_p7)
}
 0x1dd   :  { %s394_s13 = smov 128   ;;  %s395_s14 = smov 8  }
 0x1de   :  { %265 = dma.vmem_to_hbm [thread:$0]  %s260_s6, 256, %s503_s5, [#allocation3], %s394_s13, %s394_s13, %s395_s14  }
 0x1df   :  { %389 = dma.done.wait [#allocation3], 256  }
 0x1e0   :  { %390 = vsyncadd [#allocation3], 4294967040 }
 0x1e1   :  { %269 = vsyncpa [#allocation3], 1 }

</bundles_post_ra>
